<compile_context>
chip_gen: v7x
topology: tpu7x:2x2x1
jax: 0.10.0
libtpu: 0.0.40
codegen_flags: <defaults>
</compile_context>

<pallas_src>
import functools

import jax
import jax.numpy as jnp
from jax import lax
from jax.experimental import pallas as pl
from jax.experimental.pallas import tpu as pltpu

EPS = 1e-5
LRELU_SLOPE = 0.01  # nn.LeakyReLU() default negative_slope
LANE = 128          # lane width  (N / output-feature padding)
SUB = 8             # sublane width (K / contraction-dim padding)


def _round_up(x, m):
    return (x + m - 1) // m * m


# ----------------------------------- kernel -----------------------------------

def vae_decoder_kernel(z_ref, lbl_ref, b_ref, bf_ref, cw_ref, cb_ref,
                       w1_hbm, w2_hbm, w3_hbm, wf_hbm,
                       out_ref,
                       w1_v, w2_v, w3_v, wf_v, sem):
    Dh = w1_v.shape[-1]     # hidden width padded to 128 lanes
    K2 = w2_v.shape[0]      # true hidden width padded to 8 (contraction dim)

    # Kick off the layer-1 weight DMA immediately; the fused gain/bias head matmul
    # below (the widest MXU pass in the kernel) hides it.
    cp1 = pltpu.make_async_copy(w1_hbm, w1_v, sem.at[0])
    cp1.start()

    # One fused MXU pass for all 6 conditional gain/bias heads:
    #   [gain1 | bias1 | gain2 | bias2 | gain3 | bias3]  -> (B, 6*Dh)
    gb = jnp.dot(lbl_ref[...], cw_ref[...],
                 preferred_element_type=jnp.float32) + cb_ref[...]

    b_main = b_ref[...]     # (3, Dh) biases of linear1..3

    def cbn_lrelu(x, blk):
        gain = gb[:, (2 * blk) * Dh:(2 * blk + 1) * Dh]
        bias = gb[:, (2 * blk + 1) * Dh:(2 * blk + 2) * Dh]
        # BatchNorm1d (training mode): batch mean + biased variance over real rows.
        mean = jnp.mean(x, axis=0, keepdims=True)
        xc = x - mean
        var = jnp.mean(xc * xc, axis=0, keepdims=True)
        # Fold normalize + conditional affine into one scale/shift (rsqrt -> EUP slot).
        scale = gain * lax.rsqrt(var + EPS)
        shift = bias - mean * scale
        y = x * scale + shift
        return jnp.where(y >= 0, y, LRELU_SLOPE * y)   # LeakyReLU(0.01)

    # ---- layer 1 (overlap w2 DMA behind it) ----
    cp2 = pltpu.make_async_copy(w2_hbm, w2_v, sem.at[1])
    cp2.start()
    cp1.wait()
    h = jnp.dot(z_ref[...], w1_v[...],
                preferred_element_type=jnp.float32) + b_main[0:1, :]
    h = cbn_lrelu(h, 0)

    # ---- layer 2 (overlap w3 DMA behind it) ----
    cp3 = pltpu.make_async_copy(w3_hbm, w3_v, sem.at[2])
    cp3.start()
    cp2.wait()
    h = jnp.dot(h[:, :K2], w2_v[...],
                preferred_element_type=jnp.float32) + b_main[1:2, :]
    h = cbn_lrelu(h, 1)

    # ---- layer 3 (overlap final-layer weight DMA behind it) ----
    cpf = pltpu.make_async_copy(wf_hbm, wf_v, sem.at[3])
    cpf.start()
    cp3.wait()
    h = jnp.dot(h[:, :K2], w3_v[...],
                preferred_element_type=jnp.float32) + b_main[2:3, :]
    h = cbn_lrelu(h, 2)

    # ---- final layer ----
    cpf.wait()
    out = jnp.dot(h[:, :K2], wf_v[...],
                  preferred_element_type=jnp.float32) + bf_ref[...]
    out_ref[...] = out.astype(out_ref.dtype)
    # TODO(synk): for a large out_feature, tile this final matmul over its N dim with
    # a grid axis (independent of the full-batch BN constraint on the hidden layers).


# ------------------------------- param packing --------------------------------

def pack_params(params, *, in_feature, class_dim, latent_dim, out_feature):
    """Pack the 20 per-layer tensors into per-layer padded arrays (done once).

    Lane (N) dims pad to 128; contraction (K) dims pad only to 8.
    """
    hid = 2 * latent_dim
    Dh = _round_up(hid, LANE)
    Do = _round_up(out_feature, LANE)
    K1 = _round_up(in_feature, SUB)
    K2 = _round_up(hid, SUB)
    KC = _round_up(class_dim, SUB)

    def pad2(a, rows, cols):
        return jnp.pad(a, ((0, rows - a.shape[0]), (0, cols - a.shape[1])))

    chead_w = jnp.concatenate(
        [pad2(params["cw1"], KC, Dh), pad2(params["cb1"], KC, Dh),
         pad2(params["cw2"], KC, Dh), pad2(params["cb2"], KC, Dh),
         pad2(params["cw3"], KC, Dh), pad2(params["cb3"], KC, Dh)], axis=1)   # (KC, 6*Dh)
    chead_b = jnp.concatenate(
        [pad2(params["cwb1"], 1, Dh), pad2(params["cbb1"], 1, Dh),
         pad2(params["cwb2"], 1, Dh), pad2(params["cbb2"], 1, Dh),
         pad2(params["cwb3"], 1, Dh), pad2(params["cbb3"], 1, Dh)], axis=1)   # (1, 6*Dh)

    return {
        "w1": pad2(params["w1"], K1, Dh),
        "w2": pad2(params["w2"], K2, Dh),
        "w3": pad2(params["w3"], K2, Dh),
        "wf": pad2(params["wf"], K2, Do),
        "b123": jnp.concatenate([pad2(params["b1"], 1, Dh),
                                 pad2(params["b2"], 1, Dh),
                                 pad2(params["b3"], 1, Dh)], axis=0),          # (3, Dh)
        "bf": pad2(params["bf"], 1, Do),                                       # (1, Do)
        "chead_w": chead_w,
        "chead_b": chead_b,
    }


# --------------------------------- wrapper -------------------------------------

@functools.partial(jax.jit, static_argnames=("out_feature",))
def vae_decoder_forward(z, label, packed, *, out_feature):
    # NOTE (v6e/v7x): MXU weight-push cost is independent of B -- stack multiple
    # decoder invocations into one larger batch here rather than calling per-sample.
    # NOTE (v7x): one call occupies a single TensorCore; run two independent batches
    # per chip for throughput (a single call cannot be core-split: BN needs the
    # full-batch statistics).
    B = z.shape[0]
    w1, w2, w3, wf = packed["w1"], packed["w2"], packed["w3"], packed["wf"]
    b123, bf = packed["b123"], packed["bf"]
    chead_w, chead_b = packed["chead_w"], packed["chead_b"]
    K1, Dh = w1.shape
    K2 = w2.shape[0]
    Do = wf.shape[1]
    KC = chead_w.shape[0]

    # Pad activations only along K (to a multiple of 8); batch is NEVER padded.
    z_p = jnp.pad(z.astype(jnp.float32), ((0, 0), (0, K1 - z.shape[1])))
    lbl_p = jnp.pad(label.astype(jnp.float32), ((0, 0), (0, KC - label.shape[1])))

    vmem = pl.BlockSpec(memory_space=pltpu.MemorySpace.VMEM)
    hbm = pl.BlockSpec(memory_space=pl.ANY)   # main weights: manual, overlapped DMA

    # Cost estimate (no multi-pass fudge factors): 4 main matmuls + fused head matmul
    # + ~10 VPU ops/element for the 3 folded conditional BN + LeakyReLU blocks.
    flops = 2 * B * (KC * 6 * Dh + K1 * Dh + 2 * K2 * Dh + K2 * Do) + 10 * B * Dh * 3
    param_bytes = 4 * (w1.size + w2.size + w3.size + wf.size
                       + b123.size + bf.size + chead_w.size + chead_b.size)
    bytes_accessed = param_bytes + 4 * (z_p.size + lbl_p.size + B * Do)

    # VMEM budget: operands + weight scratch + activation temporaries, with headroom.
    vmem_need = param_bytes + 4 * (z_p.size + lbl_p.size + B * Do + 10 * B * Dh)
    vmem_limit = int(min(max(2 * vmem_need, 4 * 1024 * 1024), 32 * 1024 * 1024))

    out_p = pl.pallas_call(
        vae_decoder_kernel,
        out_shape=jax.ShapeDtypeStruct((B, Do), jnp.float32),
        in_specs=[vmem, vmem, vmem, vmem, vmem, vmem, hbm, hbm, hbm, hbm],
        out_specs=vmem,
        scratch_shapes=[
            pltpu.VMEM((K1, Dh), jnp.float32),   # w1 landing buffer
            pltpu.VMEM((K2, Dh), jnp.float32),   # w2
            pltpu.VMEM((K2, Dh), jnp.float32),   # w3
            pltpu.VMEM((K2, Do), jnp.float32),   # wf
            pltpu.SemaphoreType.DMA((4,)),
        ],
        compiler_params=pltpu.CompilerParams(vmem_limit_bytes=vmem_limit),
        cost_estimate=pl.CostEstimate(flops=flops, transcendentals=3 * Dh,
                                      bytes_accessed=bytes_accessed),
    )(z_p, lbl_p, b123, bf, chead_w, chead_b, w1, w2, w3, wf)

    # Lane-dense store in-kernel; slice back to the logical output width here.
    return out_p[:, :out_feature]
    # TODO(synk): for large batch, add a batch-tiled grid with cross-tile sum /
    # sum-of-squares accumulators for the batch norm (hard correctness constraint).


# -------------------- parameter init (deterministic, xavier-like) --------------------

def _xavier(key, fan_in, fan_out):
    limit = jnp.sqrt(6.0 / (fan_in + fan_out))
    return jax.random.uniform(key, (fan_in, fan_out), jnp.float32, -limit, limit)


def init_params(key, in_feature, class_dim, latent_dim, out_feature):
    hid = 2 * latent_dim
    keys = jax.random.split(key, 12)
    z2 = lambda n: jnp.zeros((1, n), jnp.float32)
    return {
        # linear1
        "w1": _xavier(keys[0], in_feature, hid), "b1": z2(hid),
        # conditional_batch_norm1 gain / bias heads (Linear(class_dim, hid))
        "cw1": _xavier(keys[1], class_dim, hid), "cwb1": z2(hid),
        "cb1": _xavier(keys[2], class_dim, hid), "cbb1": z2(hid),
        # linear2
        "w2": _xavier(keys[3], hid, hid), "b2": z2(hid),
        "cw2": _xavier(keys[4], class_dim, hid), "cwb2": z2(hid),
        "cb2": _xavier(keys[5], class_dim, hid), "cbb2": z2(hid),
        # linear3
        "w3": _xavier(keys[6], hid, hid), "b3": z2(hid),
        "cw3": _xavier(keys[7], class_dim, hid), "cwb3": z2(hid),
        "cb3": _xavier(keys[8], class_dim, hid), "cbb3": z2(hid),
        # final_layer
        "wf": _xavier(keys[9], hid, out_feature), "bf": z2(out_feature),
    }


# -------------------- pure-JAX reference (for correctness check) --------------------

def _lrelu(x):
    return jnp.where(x >= 0, x, LRELU_SLOPE * x)


def reference_forward(z, label, p):
    def cbn(x, cw, cwb, cb, cbb):
        gain = label @ cw + cwb
        bias = label @ cb + cbb
        mean = jnp.mean(x, axis=0, keepdims=True)
        var = jnp.mean((x - mean) ** 2, axis=0, keepdims=True)
        return gain * ((x - mean) / jnp.sqrt(var + EPS)) + bias

    h = z @ p["w1"] + p["b1"]
    h = _lrelu(cbn(h, p["cw1"], p["cwb1"], p["cb1"], p["cbb1"]))
    h = h @ p["w2"] + p["b2"]
    h = _lrelu(cbn(h, p["cw2"], p["cwb2"], p["cb2"], p["cbb2"]))
    h = h @ p["w3"] + p["b3"]
    h = _lrelu(cbn(h, p["cw3"], p["cwb3"], p["cb3"], p["cbb3"]))
    return h @ p["wf"] + p["bf"]


if __name__ == "__main__":
    # Small shapes consistent with the module (in_feature, class_dim, latent_dim, out_feature)
    B, IN_FEATURE, CLASS_DIM, LATENT_DIM, OUT_FEATURE = 8, 64, 96, 32, 32

    key = jax.random.PRNGKey(0)
    k_params, k_z, k_label = jax.random.split(key, 3)

    params = init_params(k_params, IN_FEATURE, CLASS_DIM, LATENT_DIM, OUT_FEATURE)
    packed = pack_params(params, in_feature=IN_FEATURE, class_dim=CLASS_DIM,
                         latent_dim=LATENT_DIM, out_feature=OUT_FEATURE)

    z = jax.random.normal(k_z, (B, IN_FEATURE), jnp.float32)
    label = jax.random.normal(k_label, (B, CLASS_DIM), jnp.float32)

    out = vae_decoder_forward(z, label, packed, out_feature=OUT_FEATURE)
    out = jax.block_until_ready(out)

    ref = reference_forward(z, label, params)
    assert out.shape == (B, OUT_FEATURE)
    assert jnp.allclose(out, ref, atol=5e-4, rtol=5e-4), "mismatch vs reference"

    print("KERNEL_OK")
</pallas_src>

<mosaic_0001>
module attributes {stable_mosaic.version = 11 : i64} {
  func.func @vae_decoder_kernel(%arg0: memref<8x64xf32, #tpu.memory_space<vmem>>, %arg1: memref<8x96xf32, #tpu.memory_space<vmem>>, %arg2: memref<3x128xf32, #tpu.memory_space<vmem>>, %arg3: memref<1x128xf32, #tpu.memory_space<vmem>>, %arg4: memref<96x768xf32, #tpu.memory_space<vmem>>, %arg5: memref<1x768xf32, #tpu.memory_space<vmem>>, %arg6: memref<64x128xf32, #tpu.memory_space<any>>, %arg7: memref<64x128xf32, #tpu.memory_space<any>>, %arg8: memref<64x128xf32, #tpu.memory_space<any>>, %arg9: memref<64x128xf32, #tpu.memory_space<any>>, %arg10: memref<8x128xf32, #tpu.memory_space<vmem>>, %arg11: memref<64x128xf32, #tpu.memory_space<vmem>>, %arg12: memref<64x128xf32, #tpu.memory_space<vmem>>, %arg13: memref<64x128xf32, #tpu.memory_space<vmem>>, %arg14: memref<64x128xf32, #tpu.memory_space<vmem>>, %arg15: memref<4x!tpu.dma_semaphore, #tpu.memory_space<semaphore_mem>>) attributes {dimension_semantics = [], scalar_prefetch = 0 : i64, scratch_operands = 5 : i64, tpu.core_type = #tpu.core_type<tc>} {
    %c0_i32 = arith.constant 0 : i32
    %0 = tpu.memref_slice %arg15[%c0_i32] : memref<4x!tpu.dma_semaphore, #tpu.memory_space<semaphore_mem>> -> memref<1x!tpu.dma_semaphore, #tpu.memory_space<semaphore_mem>>
    %1 = tpu.memref_squeeze %0 : memref<1x!tpu.dma_semaphore, #tpu.memory_space<semaphore_mem>> -> memref<!tpu.dma_semaphore, #tpu.memory_space<semaphore_mem>>
    tpu.enqueue_dma source(%arg6 : memref<64x128xf32, #tpu.memory_space<any>>) target(%arg11 : memref<64x128xf32, #tpu.memory_space<vmem>>) target_semaphore(%1 : memref<!tpu.dma_semaphore, #tpu.memory_space<semaphore_mem>>)
    %c0 = arith.constant 0 : index
    %c0_0 = arith.constant 0 : index
    %2 = vector.load %arg1[%c0, %c0_0] : memref<8x96xf32, #tpu.memory_space<vmem>>, vector<8x96xf32>
    %c0_1 = arith.constant 0 : index
    %c0_2 = arith.constant 0 : index
    %3 = vector.load %arg4[%c0_1, %c0_2] : memref<96x768xf32, #tpu.memory_space<vmem>>, vector<96x768xf32>
    %cst = arith.constant dense<0.000000e+00> : vector<8x768xf32>
    %4 = tpu.matmul %2, %3, %cst {dimension_numbers = #tpu.dot_dimension_numbers<[1], [0], [0], [1], [0, 0, 1, 1], [], []>} : vector<8x96xf32>, vector<96x768xf32>, vector<8x768xf32> -> vector<8x768xf32>
    %c0_3 = arith.constant 0 : index
    %c0_4 = arith.constant 0 : index
    %5 = vector.load %arg5[%c0_3, %c0_4] : memref<1x768xf32, #tpu.memory_space<vmem>>, vector<1x768xf32>
    %6 = vector.broadcast %5 : vector<1x768xf32> to vector<8x768xf32>
    %7 = arith.addf %4, %6 : vector<8x768xf32>
    %c0_5 = arith.constant 0 : index
    %c0_6 = arith.constant 0 : index
    %8 = vector.load %arg2[%c0_5, %c0_6] : memref<3x128xf32, #tpu.memory_space<vmem>>, vector<3x128xf32>
    %c1_i32 = arith.constant 1 : i32
    %9 = tpu.memref_slice %arg15[%c1_i32] : memref<4x!tpu.dma_semaphore, #tpu.memory_space<semaphore_mem>> -> memref<1x!tpu.dma_semaphore, #tpu.memory_space<semaphore_mem>>
    %10 = tpu.memref_squeeze %9 : memref<1x!tpu.dma_semaphore, #tpu.memory_space<semaphore_mem>> -> memref<!tpu.dma_semaphore, #tpu.memory_space<semaphore_mem>>
    tpu.enqueue_dma source(%arg7 : memref<64x128xf32, #tpu.memory_space<any>>) target(%arg12 : memref<64x128xf32, #tpu.memory_space<vmem>>) target_semaphore(%10 : memref<!tpu.dma_semaphore, #tpu.memory_space<semaphore_mem>>)
    %c0_i32_7 = arith.constant 0 : i32
    %11 = tpu.memref_slice %arg15[%c0_i32_7] : memref<4x!tpu.dma_semaphore, #tpu.memory_space<semaphore_mem>> -> memref<1x!tpu.dma_semaphore, #tpu.memory_space<semaphore_mem>>
    %12 = tpu.memref_squeeze %11 : memref<1x!tpu.dma_semaphore, #tpu.memory_space<semaphore_mem>> -> memref<!tpu.dma_semaphore, #tpu.memory_space<semaphore_mem>>
    tpu.wait_dma2 semaphore(%12 : memref<!tpu.dma_semaphore, #tpu.memory_space<semaphore_mem>>) src(%arg6 : memref<64x128xf32, #tpu.memory_space<any>>) dst(%arg11 : memref<64x128xf32, #tpu.memory_space<vmem>>)
    %c0_8 = arith.constant 0 : index
    %c0_9 = arith.constant 0 : index
    %13 = vector.load %arg0[%c0_8, %c0_9] : memref<8x64xf32, #tpu.memory_space<vmem>>, vector<8x64xf32>
    %c0_10 = arith.constant 0 : index
    %c0_11 = arith.constant 0 : index
    %14 = vector.load %arg11[%c0_10, %c0_11] : memref<64x128xf32, #tpu.memory_space<vmem>>, vector<64x128xf32>
    %cst_12 = arith.constant dense<0.000000e+00> : vector<8x128xf32>
    %15 = tpu.matmul %13, %14, %cst_12 {dimension_numbers = #tpu.dot_dimension_numbers<[1], [0], [0], [1], [0, 0, 1, 1], [], []>} : vector<8x64xf32>, vector<64x128xf32>, vector<8x128xf32> -> vector<8x128xf32>
    %16 = vector.extract_strided_slice %8 {offsets = [0, 0], sizes = [1, 128], strides = [1, 1]} : vector<3x128xf32> to vector<1x128xf32>
    %17 = vector.broadcast %16 : vector<1x128xf32> to vector<8x128xf32>
    %18 = arith.addf %15, %17 : vector<8x128xf32>
    %19 = vector.extract_strided_slice %7 {offsets = [0, 0], sizes = [8, 128], strides = [1, 1]} : vector<8x768xf32> to vector<8x128xf32>
    %20 = vector.extract_strided_slice %7 {offsets = [0, 128], sizes = [8, 128], strides = [1, 1]} : vector<8x768xf32> to vector<8x128xf32>
    %cst_13 = arith.constant dense<0.000000e+00> : vector<128xf32>
    %21 = vector.multi_reduction <add>, %18, %cst_13 [0] : vector<8x128xf32> to vector<128xf32>
    %22 = vector.shape_cast %21 : vector<128xf32> to vector<1x128xf32>
    %cst_14 = arith.constant 8.000000e+00 : f32
    %23 = vector.broadcast %cst_14 : f32 to vector<1x128xf32>
    %24 = arith.divf %22, %23 : vector<1x128xf32>
    %25 = vector.broadcast %24 : vector<1x128xf32> to vector<8x128xf32>
    %26 = arith.subf %18, %25 : vector<8x128xf32>
    %27 = arith.mulf %26, %26 : vector<8x128xf32>
    %cst_15 = arith.constant dense<0.000000e+00> : vector<128xf32>
    %28 = vector.multi_reduction <add>, %27, %cst_15 [0] : vector<8x128xf32> to vector<128xf32>
    %29 = vector.shape_cast %28 : vector<128xf32> to vector<1x128xf32>
    %cst_16 = arith.constant 8.000000e+00 : f32
    %30 = vector.broadcast %cst_16 : f32 to vector<1x128xf32>
    %31 = arith.divf %29, %30 : vector<1x128xf32>
    %cst_17 = arith.constant 9.99999974E-6 : f32
    %32 = vector.broadcast %cst_17 : f32 to vector<1x128xf32>
    %33 = arith.addf %31, %32 : vector<1x128xf32>
    %34 = math.rsqrt %33 : vector<1x128xf32>
    %35 = vector.broadcast %34 : vector<1x128xf32> to vector<8x128xf32>
    %36 = arith.mulf %19, %35 : vector<8x128xf32>
    %37 = vector.broadcast %24 : vector<1x128xf32> to vector<8x128xf32>
    %38 = arith.mulf %37, %36 : vector<8x128xf32>
    %39 = arith.subf %20, %38 : vector<8x128xf32>
    %40 = arith.mulf %18, %36 : vector<8x128xf32>
    %41 = arith.addf %40, %39 : vector<8x128xf32>
    %cst_18 = arith.constant 0.000000e+00 : f32
    %42 = vector.broadcast %cst_18 : f32 to vector<8x128xf32>
    %43 = arith.cmpf oge, %41, %42 : vector<8x128xf32>
    %cst_19 = arith.constant 0.00999999977 : f32
    %44 = vector.broadcast %cst_19 : f32 to vector<8x128xf32>
    %45 = arith.mulf %44, %41 : vector<8x128xf32>
    %46 = arith.select %43, %41, %45 : vector<8x128xi1>, vector<8x128xf32>
    %c2_i32 = arith.constant 2 : i32
    %47 = tpu.memref_slice %arg15[%c2_i32] : memref<4x!tpu.dma_semaphore, #tpu.memory_space<semaphore_mem>> -> memref<1x!tpu.dma_semaphore, #tpu.memory_space<semaphore_mem>>
    %48 = tpu.memref_squeeze %47 : memref<1x!tpu.dma_semaphore, #tpu.memory_space<semaphore_mem>> -> memref<!tpu.dma_semaphore, #tpu.memory_space<semaphore_mem>>
    tpu.enqueue_dma source(%arg8 : memref<64x128xf32, #tpu.memory_space<any>>) target(%arg13 : memref<64x128xf32, #tpu.memory_space<vmem>>) target_semaphore(%48 : memref<!tpu.dma_semaphore, #tpu.memory_space<semaphore_mem>>)
    %c1_i32_20 = arith.constant 1 : i32
    %49 = tpu.memref_slice %arg15[%c1_i32_20] : memref<4x!tpu.dma_semaphore, #tpu.memory_space<semaphore_mem>> -> memref<1x!tpu.dma_semaphore, #tpu.memory_space<semaphore_mem>>
    %50 = tpu.memref_squeeze %49 : memref<1x!tpu.dma_semaphore, #tpu.memory_space<semaphore_mem>> -> memref<!tpu.dma_semaphore, #tpu.memory_space<semaphore_mem>>
    tpu.wait_dma2 semaphore(%50 : memref<!tpu.dma_semaphore, #tpu.memory_space<semaphore_mem>>) src(%arg7 : memref<64x128xf32, #tpu.memory_space<any>>) dst(%arg12 : memref<64x128xf32, #tpu.memory_space<vmem>>)
    %51 = vector.extract_strided_slice %46 {offsets = [0, 0], sizes = [8, 64], strides = [1, 1]} : vector<8x128xf32> to vector<8x64xf32>
    %c0_21 = arith.constant 0 : index
    %c0_22 = arith.constant 0 : index
    %52 = vector.load %arg12[%c0_21, %c0_22] : memref<64x128xf32, #tpu.memory_space<vmem>>, vector<64x128xf32>
    %cst_23 = arith.constant dense<0.000000e+00> : vector<8x128xf32>
    %53 = tpu.matmul %51, %52, %cst_23 {dimension_numbers = #tpu.dot_dimension_numbers<[1], [0], [0], [1], [0, 0, 1, 1], [], []>} : vector<8x64xf32>, vector<64x128xf32>, vector<8x128xf32> -> vector<8x128xf32>
    %54 = vector.extract_strided_slice %8 {offsets = [1, 0], sizes = [1, 128], strides = [1, 1]} : vector<3x128xf32> to vector<1x128xf32>
    %55 = vector.broadcast %54 : vector<1x128xf32> to vector<8x128xf32>
    %56 = arith.addf %53, %55 : vector<8x128xf32>
    %57 = vector.extract_strided_slice %7 {offsets = [0, 256], sizes = [8, 128], strides = [1, 1]} : vector<8x768xf32> to vector<8x128xf32>
    %58 = vector.extract_strided_slice %7 {offsets = [0, 384], sizes = [8, 128], strides = [1, 1]} : vector<8x768xf32> to vector<8x128xf32>
    %cst_24 = arith.constant dense<0.000000e+00> : vector<128xf32>
    %59 = vector.multi_reduction <add>, %56, %cst_24 [0] : vector<8x128xf32> to vector<128xf32>
    %60 = vector.shape_cast %59 : vector<128xf32> to vector<1x128xf32>
    %cst_25 = arith.constant 8.000000e+00 : f32
    %61 = vector.broadcast %cst_25 : f32 to vector<1x128xf32>
    %62 = arith.divf %60, %61 : vector<1x128xf32>
    %63 = vector.broadcast %62 : vector<1x128xf32> to vector<8x128xf32>
    %64 = arith.subf %56, %63 : vector<8x128xf32>
    %65 = arith.mulf %64, %64 : vector<8x128xf32>
    %cst_26 = arith.constant dense<0.000000e+00> : vector<128xf32>
    %66 = vector.multi_reduction <add>, %65, %cst_26 [0] : vector<8x128xf32> to vector<128xf32>
    %67 = vector.shape_cast %66 : vector<128xf32> to vector<1x128xf32>
    %cst_27 = arith.constant 8.000000e+00 : f32
    %68 = vector.broadcast %cst_27 : f32 to vector<1x128xf32>
    %69 = arith.divf %67, %68 : vector<1x128xf32>
    %cst_28 = arith.constant 9.99999974E-6 : f32
    %70 = vector.broadcast %cst_28 : f32 to vector<1x128xf32>
    %71 = arith.addf %69, %70 : vector<1x128xf32>
    %72 = math.rsqrt %71 : vector<1x128xf32>
    %73 = vector.broadcast %72 : vector<1x128xf32> to vector<8x128xf32>
    %74 = arith.mulf %57, %73 : vector<8x128xf32>
    %75 = vector.broadcast %62 : vector<1x128xf32> to vector<8x128xf32>
    %76 = arith.mulf %75, %74 : vector<8x128xf32>
    %77 = arith.subf %58, %76 : vector<8x128xf32>
    %78 = arith.mulf %56, %74 : vector<8x128xf32>
    %79 = arith.addf %78, %77 : vector<8x128xf32>
    %cst_29 = arith.constant 0.000000e+00 : f32
    %80 = vector.broadcast %cst_29 : f32 to vector<8x128xf32>
    %81 = arith.cmpf oge, %79, %80 : vector<8x128xf32>
    %cst_30 = arith.constant 0.00999999977 : f32
    %82 = vector.broadcast %cst_30 : f32 to vector<8x128xf32>
    %83 = arith.mulf %82, %79 : vector<8x128xf32>
    %84 = arith.select %81, %79, %83 : vector<8x128xi1>, vector<8x128xf32>
    %c3_i32 = arith.constant 3 : i32
    %85 = tpu.memref_slice %arg15[%c3_i32] : memref<4x!tpu.dma_semaphore, #tpu.memory_space<semaphore_mem>> -> memref<1x!tpu.dma_semaphore, #tpu.memory_space<semaphore_mem>>
    %86 = tpu.memref_squeeze %85 : memref<1x!tpu.dma_semaphore, #tpu.memory_space<semaphore_mem>> -> memref<!tpu.dma_semaphore, #tpu.memory_space<semaphore_mem>>
    tpu.enqueue_dma source(%arg9 : memref<64x128xf32, #tpu.memory_space<any>>) target(%arg14 : memref<64x128xf32, #tpu.memory_space<vmem>>) target_semaphore(%86 : memref<!tpu.dma_semaphore, #tpu.memory_space<semaphore_mem>>)
    %c2_i32_31 = arith.constant 2 : i32
    %87 = tpu.memref_slice %arg15[%c2_i32_31] : memref<4x!tpu.dma_semaphore, #tpu.memory_space<semaphore_mem>> -> memref<1x!tpu.dma_semaphore, #tpu.memory_space<semaphore_mem>>
    %88 = tpu.memref_squeeze %87 : memref<1x!tpu.dma_semaphore, #tpu.memory_space<semaphore_mem>> -> memref<!tpu.dma_semaphore, #tpu.memory_space<semaphore_mem>>
    tpu.wait_dma2 semaphore(%88 : memref<!tpu.dma_semaphore, #tpu.memory_space<semaphore_mem>>) src(%arg8 : memref<64x128xf32, #tpu.memory_space<any>>) dst(%arg13 : memref<64x128xf32, #tpu.memory_space<vmem>>)
    %89 = vector.extract_strided_slice %84 {offsets = [0, 0], sizes = [8, 64], strides = [1, 1]} : vector<8x128xf32> to vector<8x64xf32>
    %c0_32 = arith.constant 0 : index
    %c0_33 = arith.constant 0 : index
    %90 = vector.load %arg13[%c0_32, %c0_33] : memref<64x128xf32, #tpu.memory_space<vmem>>, vector<64x128xf32>
    %cst_34 = arith.constant dense<0.000000e+00> : vector<8x128xf32>
    %91 = tpu.matmul %89, %90, %cst_34 {dimension_numbers = #tpu.dot_dimension_numbers<[1], [0], [0], [1], [0, 0, 1, 1], [], []>} : vector<8x64xf32>, vector<64x128xf32>, vector<8x128xf32> -> vector<8x128xf32>
    %92 = vector.extract_strided_slice %8 {offsets = [2, 0], sizes = [1, 128], strides = [1, 1]} : vector<3x128xf32> to vector<1x128xf32>
    %93 = vector.broadcast %92 : vector<1x128xf32> to vector<8x128xf32>
    %94 = arith.addf %91, %93 : vector<8x128xf32>
    %95 = vector.extract_strided_slice %7 {offsets = [0, 512], sizes = [8, 128], strides = [1, 1]} : vector<8x768xf32> to vector<8x128xf32>
    %96 = vector.extract_strided_slice %7 {offsets = [0, 640], sizes = [8, 128], strides = [1, 1]} : vector<8x768xf32> to vector<8x128xf32>
    %cst_35 = arith.constant dense<0.000000e+00> : vector<128xf32>
    %97 = vector.multi_reduction <add>, %94, %cst_35 [0] : vector<8x128xf32> to vector<128xf32>
    %98 = vector.shape_cast %97 : vector<128xf32> to vector<1x128xf32>
    %cst_36 = arith.constant 8.000000e+00 : f32
    %99 = vector.broadcast %cst_36 : f32 to vector<1x128xf32>
    %100 = arith.divf %98, %99 : vector<1x128xf32>
    %101 = vector.broadcast %100 : vector<1x128xf32> to vector<8x128xf32>
    %102 = arith.subf %94, %101 : vector<8x128xf32>
    %103 = arith.mulf %102, %102 : vector<8x128xf32>
    %cst_37 = arith.constant dense<0.000000e+00> : vector<128xf32>
    %104 = vector.multi_reduction <add>, %103, %cst_37 [0] : vector<8x128xf32> to vector<128xf32>
    %105 = vector.shape_cast %104 : vector<128xf32> to vector<1x128xf32>
    %cst_38 = arith.constant 8.000000e+00 : f32
    %106 = vector.broadcast %cst_38 : f32 to vector<1x128xf32>
    %107 = arith.divf %105, %106 : vector<1x128xf32>
    %cst_39 = arith.constant 9.99999974E-6 : f32
    %108 = vector.broadcast %cst_39 : f32 to vector<1x128xf32>
    %109 = arith.addf %107, %108 : vector<1x128xf32>
    %110 = math.rsqrt %109 : vector<1x128xf32>
    %111 = vector.broadcast %110 : vector<1x128xf32> to vector<8x128xf32>
    %112 = arith.mulf %95, %111 : vector<8x128xf32>
    %113 = vector.broadcast %100 : vector<1x128xf32> to vector<8x128xf32>
    %114 = arith.mulf %113, %112 : vector<8x128xf32>
    %115 = arith.subf %96, %114 : vector<8x128xf32>
    %116 = arith.mulf %94, %112 : vector<8x128xf32>
    %117 = arith.addf %116, %115 : vector<8x128xf32>
    %cst_40 = arith.constant 0.000000e+00 : f32
    %118 = vector.broadcast %cst_40 : f32 to vector<8x128xf32>
    %119 = arith.cmpf oge, %117, %118 : vector<8x128xf32>
    %cst_41 = arith.constant 0.00999999977 : f32
    %120 = vector.broadcast %cst_41 : f32 to vector<8x128xf32>
    %121 = arith.mulf %120, %117 : vector<8x128xf32>
    %122 = arith.select %119, %117, %121 : vector<8x128xi1>, vector<8x128xf32>
    %c3_i32_42 = arith.constant 3 : i32
    %123 = tpu.memref_slice %arg15[%c3_i32_42] : memref<4x!tpu.dma_semaphore, #tpu.memory_space<semaphore_mem>> -> memref<1x!tpu.dma_semaphore, #tpu.memory_space<semaphore_mem>>
    %124 = tpu.memref_squeeze %123 : memref<1x!tpu.dma_semaphore, #tpu.memory_space<semaphore_mem>> -> memref<!tpu.dma_semaphore, #tpu.memory_space<semaphore_mem>>
    tpu.wait_dma2 semaphore(%124 : memref<!tpu.dma_semaphore, #tpu.memory_space<semaphore_mem>>) src(%arg9 : memref<64x128xf32, #tpu.memory_space<any>>) dst(%arg14 : memref<64x128xf32, #tpu.memory_space<vmem>>)
    %125 = vector.extract_strided_slice %122 {offsets = [0, 0], sizes = [8, 64], strides = [1, 1]} : vector<8x128xf32> to vector<8x64xf32>
    %c0_43 = arith.constant 0 : index
    %c0_44 = arith.constant 0 : index
    %126 = vector.load %arg14[%c0_43, %c0_44] : memref<64x128xf32, #tpu.memory_space<vmem>>, vector<64x128xf32>
    %cst_45 = arith.constant dense<0.000000e+00> : vector<8x128xf32>
    %127 = tpu.matmul %125, %126, %cst_45 {dimension_numbers = #tpu.dot_dimension_numbers<[1], [0], [0], [1], [0, 0, 1, 1], [], []>} : vector<8x64xf32>, vector<64x128xf32>, vector<8x128xf32> -> vector<8x128xf32>
    %c0_46 = arith.constant 0 : index
    %c0_47 = arith.constant 0 : index
    %128 = vector.load %arg3[%c0_46, %c0_47] : memref<1x128xf32, #tpu.memory_space<vmem>>, vector<1x128xf32>
    %129 = vector.broadcast %128 : vector<1x128xf32> to vector<8x128xf32>
    %130 = arith.addf %127, %129 : vector<8x128xf32>
    %c0_48 = arith.constant 0 : index
    %c0_49 = arith.constant 0 : index
    %131 = vector.load %arg10[%c0_48, %c0_49] : memref<8x128xf32, #tpu.memory_space<vmem>>, vector<8x128xf32>
    tpu.vector_store %arg10[%c0_48, %c0_49], %130 {strides = array<i32>} : memref<8x128xf32, #tpu.memory_space<vmem>>, vector<8x128xf32>,
    return
  }
}

</mosaic_0001>

<bundles_post_ra>
// kernel: vae_decoder_forward.1
= control target key start
LH: loop header
LB: loop body
LE: loop exit
PB: predicated region body
PF: predicated region fallthrough
CT: control target
= control target key end

     0   :  { %15 = vsyncpa [#allocation8], 0  ;;  %s1615_s0 = inlined_call_operand.hbm [shape: f32[8,64], index: 0, kind: input, shape index: {}]   ;;  %s1616_s1 = inlined_call_operand.hbm [shape: f32[8,96], index: 1, kind: input, shape index: {}]   ;;  %s1617_s2 = inlined_call_operand.vmem [shape: f32[3,128], index: 2, kind: input, shape index: {}]   ;;  %s1618_s3 = inlined_call_operand.vmem [shape: f32[1,128], index: 3, kind: input, shape index: {}]   ;;  %s1619_s4 = inlined_call_operand.hbm [shape: f32[96,768], index: 4, kind: input, shape index: {}]   ;;  %s1620_s5 = inlined_call_operand.vmem [shape: f32[1,768], index: 5, kind: input, shape index: {}]   ;;  %s1621_s6 = inlined_call_operand.hbm [shape: f32[64,128], index: 6, kind: input, shape index: {}]   ;;  %s1622_s7 = inlined_call_operand.hbm [shape: f32[64,128], index: 7, kind: input, shape index: {}]   ;;  %s1623_s8 = inlined_call_operand.hbm [shape: f32[64,128], index: 8, kind: input, shape index: {}]   ;;  %s1624_s9 = inlined_call_operand.hbm [shape: f32[64,128], index: 9, kind: input, shape index: {}]   ;;  %s1625_s10 = inlined_call_operand.hbm [shape: f32[8,128], index: 10, kind: output, shape index: {}]  }
   0x1   :  { %16 = vsyncpa [#allocation11], 0 }
   0x2   :  { %17 = vsyncpa [#allocation9], 0  ;;  %s1365_s13 = smov [#allocation10]   ;;  %s1366_s15 = smov [#allocation7]  }
   0x3   :  { %s34_s14 = sshll.u32 %s1365_s13, 4  ;;  %s24_s16 = sshll.u32 %s1366_s15, 4  ;;  %s35_s14 = int_to_ptr.vmem [resolvable:$true] %s34_s14  ;;  %s25_s16 = int_to_ptr.vmem [resolvable:$true] %s24_s16 }
   0x4   :  { %s1175_s19 = scalar_lea.hbm %s1616_s1, 128 }
   0x5   :  { %p1176_p0 = scmp.ne.s32.totalorder %s1616_s1, %s1175_s19  ;;  %p1179_p1 = scmp.lt.u32.totalorder %s1175_s19, %s1616_s1 }
   0x7   :  { %p1181_p2 = pnand %p1179_p1, %p1176_p0 }
   0x9   :  { %1184 = shalt.err (!%p1181_p2)
}
   0xa   :  { %s1185_s24 = scalar_lea.vmem %s35_s14, 128  ;;  %p1190_p4 = scmp.lt.s32.totalorder %s35_s14, %s35_s14 }
   0xb   :  { %p1186_p3 = scmp.ne.s32.totalorder %s35_s14, %s1185_s24  ;;  %p1191_p5 = scmp.lt.s32.totalorder %s1185_s24, %s1185_s24 }
   0xd   :  { %p1192_p6 = por %p1191_p5, %p1190_p4 }
   0xf   :  { %p1193_p7 = pnand %p1192_p6, %p1186_p3 }
  0x11   :  { %1196 = shalt.err (!%p1193_p7)
}
  0x12   :  { %37 = dma.hbm_to_vmem [thread:$0]  %s1616_s1, 128, %s35_s14, [#allocation11]  }
  0x13   :  { %s1197_s29 = scalar_lea.hbm %s1615_s0, 128 }
  0x14   :  { %p1198_p8 = scmp.ne.s32.totalorder %s1615_s0, %s1197_s29  ;;  %p1201_p9 = scmp.lt.u32.totalorder %s1197_s29, %s1615_s0 }
  0x16   :  { %p1203_p10 = pnand %p1201_p9, %p1198_p8 }
  0x18   :  { %1206 = shalt.err (!%p1203_p10)
}
  0x19   :  { %s1207_s15 = scalar_lea.vmem %s25_s16, 128  ;;  %p1212_p12 = scmp.lt.s32.totalorder %s25_s16, %s25_s16 }
  0x1a   :  { %p1208_p11 = scmp.ne.s32.totalorder %s25_s16, %s1207_s15  ;;  %p1213_p13 = scmp.lt.s32.totalorder %s1207_s15, %s1207_s15 }
  0x1c   :  { %p1214_p0 = por %p1213_p13, %p1212_p12 }
  0x1e   :  { %p1215_p1 = pnand %p1214_p0, %p1208_p11 }
  0x20   :  { %1218 = shalt.err (!%p1215_p1)
}
  0x21   :  { %27 = dma.hbm_to_vmem [thread:$0]  %s1615_s0, 128, %s25_s16, [#allocation8]  }
  0x22   :  { %s1367_s17 = smov [#allocation12]   ;;  %s1219_s21 = scalar_lea.hbm %s1619_s4, 9216 }
  0x23   :  { %s47_s18 = sshll.u32 %s1367_s17, 4  ;;  %p1220_p2 = scmp.ne.s32.totalorder %s1619_s4, %s1219_s21  ;;  %s48_s18 = int_to_ptr.vmem [resolvable:$true] %s47_s18 }
  0x24   :  { %p1223_p3 = scmp.lt.u32.totalorder %s1219_s21, %s1619_s4 }
  0x26   :  { %p1225_p4 = pnand %p1223_p3, %p1220_p2 }
  0x28   :  { %1228 = shalt.err (!%p1225_p4)
}
  0x29   :  { %s1229_s26 = scalar_lea.vmem %s48_s18, 9216  ;;  %p1234_p6 = scmp.lt.s32.totalorder %s48_s18, %s48_s18 }
  0x2a   :  { %p1230_p5 = scmp.ne.s32.totalorder %s48_s18, %s1229_s26  ;;  %p1235_p7 = scmp.lt.s32.totalorder %s1229_s26, %s1229_s26 }
  0x2c   :  { %p1236_p8 = por %p1235_p7, %p1234_p6 }
  0x2e   :  { %p1237_p9 = pnand %p1236_p8, %p1230_p5 }
  0x30   :  { %1240 = shalt.err (!%p1237_p9)
}
  0x31   :  { %s1368_s0 = smov 768   ;;  %s1369_s16 = smov 48  }
  0x32   :  { %53 = dma.hbm_to_vmem [thread:$0]  %s1619_s4, 9216, %s48_s18, [#allocation11], %s1368_s0, %s1368_s0, %s1369_s16  }
  0x33   :  { %1351 = dma.done.wait [#allocation8], 128  }
  0x34   :  { %1352 = vsyncadd [#allocation8], 4294967168 }
  0x35   :  { %1353 = dma.done.wait [#allocation11], 9344  }
  0x36   :  { %1354 = vsyncadd [#allocation11], 4294957952  ;;  %v1370_v0 = vmov 0.0   ;;  %v1474_v1 = vld [vmem:[%s1617_s2] sm:$0x7]  ;;  %v78_v2 = vld [vmem:[#allocation12 + $0x8] sm:$0xff] }
  0x37   :  { %249 = vmatprep.mubr.f32.mxu0 %v1370_v0  ;;  %320 = vmatprep.mubr.f32.mxu1 %v1370_v0  ;;  %v84_v3 = vld [vmem:[#allocation12 + $0x38] sm:$0xff]  ;;  %v77_v5 = vld [vmem:[#allocation12] sm:$0xff]  ;;  %v83_v6 = vld [vmem:[#allocation12 + $0x30] sm:$0xff]  ;;  %vm181_vm0 = vcmask 785408   ;;  %s1371_s2 = smov [#allocation2]   ;;  %s1372_s11 = smov [#allocation3]  }
  0x38   :  { %v1036_v4 = vpack.c.bf16 %v84_v3, %v78_v2  ;;  %v90_v7 = vld [vmem:[#allocation12 + $0x68] sm:$0xff]  ;;  %v1038_v8 = vpack.c.bf16 %v83_v6, %v77_v5  ;;  %v96_v9 = vld [vmem:[#allocation12 + $0x98] sm:$0xff]  ;;  %v89_v10 = vld [vmem:[#allocation12 + $0x60] sm:$0xff]  ;;  %s72_s4 = sshll.u32 %s1371_s2, 4  ;;  %s407_s12 = sshll.u32 %s1372_s11, 4  ;;  %s73_s4 = int_to_ptr.vmem [resolvable:$true] %s72_s4  ;;  %s408_s12 = int_to_ptr.vmem [resolvable:$true] %s407_s12 }
  0x39   :  { %v95_v11 = vld [vmem:[#allocation12 + $0x90] sm:$0xff]  ;;  %v1040_v12 = vpack.c.bf16 %v96_v9, %v90_v7  ;;  %v102_v13 = vld [vmem:[#allocation12 + $0xc8] sm:$0xff]  ;;  %v108_v14 = vld [vmem:[#allocation12 + $0xf8] sm:$0xff]  ;;  %s1241_s1 = scalar_lea.hbm %s1621_s6, 1024 }
  0x3a   :  { %1037 = vmatprep.subr.bf16.mxu0 %v1036_v4  ;;  %v1042_v15 = vpack.c.bf16 %v95_v11, %v89_v10  ;;  %v1044_v16 = vpack.c.bf16 %v108_v14, %v102_v13  ;;  %v101_v17 = vld [vmem:[#allocation12 + $0xc0] sm:$0xff]  ;;  %v107_v18 = vld [vmem:[#allocation12 + $0xf0] sm:$0xff]  ;;  %v114_v19 = vld [vmem:[#allocation12 + $0x128] sm:$0xff]  ;;  %p1242_p10 = scmp.ne.s32.totalorder %s1621_s6, %s1241_s1  ;;  %p1245_p11 = scmp.lt.u32.totalorder %s1241_s1, %s1621_s6 }
  0x3b   :  { %1039 = vmatpush1.bf16.msra.mxu0 %v1038_v8  ;;  %v120_v20 = vld [vmem:[#allocation12 + $0x158] sm:$0xff]  ;;  %v1046_v21 = vpack.c.bf16 %v107_v18, %v101_v17  ;;  %v113_v22 = vld [vmem:[#allocation12 + $0x120] sm:$0xff]  ;;  %v86_v24 = vld [vmem:[#allocation12 + $0x48] sm:$0xff] }
  0x3c   :  { %1041 = vmatprep.subr.bf16.mxu0 %v1040_v12  ;;  %v80_v23 = vld [vmem:[#allocation12 + $0x18] sm:$0xff]  ;;  %v1048_v25 = vpack.c.bf16 %v120_v20, %v114_v19  ;;  %v119_v26 = vld [vmem:[#allocation12 + $0x150] sm:$0xff]  ;;  %v85_v29 = vld [vmem:[#allocation12 + $0x40] sm:$0xff]  ;;  %p1247_p12 = pnand %p1245_p11, %p1242_p10 }
  0x3d   :  { %v1060_v27 = vpack.c.bf16 %v86_v24, %v80_v23  ;;  %v79_v28 = vld [vmem:[#allocation12 + $0x10] sm:$0xff]  ;;  %v126_v30 = vld [vmem:[#allocation12 + $0x188] sm:$0xff]  ;;  %v132_v31 = vld [vmem:[#allocation12 + $0x1b8] sm:$0xff]  ;;  %v1050_v35 = vpack.c.bf16 %v119_v26, %v113_v22 }
  0x3e   :  { %v1062_v32 = vpack.c.bf16 %v85_v29, %v79_v28  ;;  %v92_v33 = vld [vmem:[#allocation12 + $0x78] sm:$0xff]  ;;  %v98_v34 = vld [vmem:[#allocation12 + $0xa8] sm:$0xff]  ;;  %v125_v36 = vld [vmem:[#allocation12 + $0x180] sm:$0xff]  ;;  %v1052_v40 = vpack.c.bf16 %v132_v31, %v126_v30 }
  0x3f   :  { %1043 = vmatpush1.bf16.msra.mxu0 %v1042_v15  ;;  %1061 = vmatprep.subr.bf16.mxu1 %v1060_v27  ;;  %v1064_v37 = vpack.c.bf16 %v98_v34, %v92_v33  ;;  %v91_v38 = vld [vmem:[#allocation12 + $0x70] sm:$0xff]  ;;  %v97_v39 = vld [vmem:[#allocation12 + $0xa0] sm:$0xff]  ;;  %v138_v42 = vld [vmem:[#allocation12 + $0x1e8] sm:$0xff] }
  0x40   :  { %1045 = vmatprep.subr.bf16.mxu0 %v1044_v16  ;;  %1063 = vmatpush1.bf16.msra.mxu1 %v1062_v32  ;;  %v131_v41 = vld [vmem:[#allocation12 + $0x1b0] sm:$0xff]  ;;  %v144_v43 = vld [vmem:[#allocation12 + $0x218] sm:$0xff]  ;;  %v1066_v44 = vpack.c.bf16 %v97_v39, %v91_v38  ;;  %v110_v46 = vld [vmem:[#allocation12 + $0x108] sm:$0xff] }
  0x41   :  { %1065 = vmatprep.subr.bf16.mxu1 %v1064_v37  ;;  %v104_v45 = vld [vmem:[#allocation12 + $0xd8] sm:$0xff]  ;;  %v103_v47 = vld [vmem:[#allocation12 + $0xd0] sm:$0xff]  ;;  %v109_v49 = vld [vmem:[#allocation12 + $0x100] sm:$0xff]  ;;  %v1054_v50 = vpack.c.bf16 %v131_v41, %v125_v36  ;;  %v1056_v55 = vpack.c.bf16 %v144_v43, %v138_v42 }
  0x42   :  { %v1068_v48 = vpack.c.bf16 %v110_v46, %v104_v45  ;;  %v137_v51 = vld [vmem:[#allocation12 + $0x1e0] sm:$0xff]  ;;  %v143_v52 = vld [vmem:[#allocation12 + $0x210] sm:$0xff]  ;;  %v1070_v53 = vpack.c.bf16 %v109_v49, %v103_v47  ;;  %v116_v54 = vld [vmem:[#allocation12 + $0x138] sm:$0xff] }
  0x43   :  { %1047 = vmatpush1.bf16.msra.mxu0 %v1046_v21  ;;  %v122_v56 = vld [vmem:[#allocation12 + $0x168] sm:$0xff]  ;;  %v115_v57 = vld [vmem:[#allocation12 + $0x130] sm:$0xff]  ;;  %v121_v58 = vld [vmem:[#allocation12 + $0x160] sm:$0xff]  ;;  %v1058_v2 = vpack.c.bf16 %v143_v52, %v137_v51 }
  0x44   :  { %1049 = vmatprep.subr.bf16.mxu0 %v1048_v25  ;;  %1067 = vmatpush1.bf16.msra.mxu1 %v1066_v44  ;;  %v82_v59 = vld [vmem:[#allocation12 + $0x28] sm:$0xff]  ;;  %v88_v60 = vld [vmem:[#allocation12 + $0x58] sm:$0xff]  ;;  %v1072_v61 = vpack.c.bf16 %v122_v56, %v116_v54  ;;  %v81_v3 = vld [vmem:[#allocation12 + $0x20] sm:$0xff]  ;;  %v1074_v5 = vpack.c.bf16 %v121_v58, %v115_v57 }
  0x45   :  { %1069 = vmatprep.subr.bf16.mxu1 %v1068_v48  ;;  %v128_v62 = vld [vmem:[#allocation12 + $0x198] sm:$0xff]  ;;  %v134_v63 = vld [vmem:[#allocation12 + $0x1c8] sm:$0xff]  ;;  %v87_v4 = vld [vmem:[#allocation12 + $0x50] sm:$0xff]  ;;  %v1084_v6 = vpack.c.bf16 %v88_v60, %v82_v59 }
  0x46   :  { %v94_v7 = vld [vmem:[#allocation12 + $0x88] sm:$0xff]  ;;  %v1076_v8 = vpack.c.bf16 %v134_v63, %v128_v62  ;;  %v127_v9 = vld [vmem:[#allocation12 + $0x190] sm:$0xff]  ;;  %v133_v10 = vld [vmem:[#allocation12 + $0x1c0] sm:$0xff]  ;;  %v1086_v15 = vpack.c.bf16 %v87_v4, %v81_v3 }
  0x47   :  { %1051 = vmatpush1.bf16.msra.mxu0 %v1050_v35  ;;  %v100_v11 = vld [vmem:[#allocation12 + $0xb8] sm:$0xff]  ;;  %v146_v13 = vld [vmem:[#allocation12 + $0x228] sm:$0xff]  ;;  %v93_v16 = vld [vmem:[#allocation12 + $0x80] sm:$0xff]  ;;  %v1078_v17 = vpack.c.bf16 %v133_v10, %v127_v9 }
  0x48   :  { %1053 = vmatprep.subr.bf16.mxu0 %v1052_v40  ;;  %1071 = vmatpush1.bf16.msra.mxu1 %v1070_v53  ;;  %v140_v12 = vld [vmem:[#allocation12 + $0x1f8] sm:$0xff]  ;;  %v1088_v18 = vpack.c.bf16 %v100_v11, %v94_v7  ;;  %v99_v19 = vld [vmem:[#allocation12 + $0xb0] sm:$0xff]  ;;  %v145_v22 = vld [vmem:[#allocation12 + $0x220] sm:$0xff] }
  0x49   :  { %1073 = vmatprep.subr.bf16.mxu1 %v1072_v61  ;;  %v76_v14 = vld [vmem:[#allocation10] sm:$0xff]  ;;  %v1080_v20 = vpack.c.bf16 %v146_v13, %v140_v12  ;;  %v139_v21 = vld [vmem:[#allocation12 + $0x1f0] sm:$0xff]  ;;  %v106_v23 = vld [vmem:[#allocation12 + $0xe8] sm:$0xff]  ;;  %v1090_v25 = vpack.c.bf16 %v99_v19, %v93_v16 }
  0x4a   :  { %v112_v24 = vld [vmem:[#allocation12 + $0x118] sm:$0xff]  ;;  %v1082_v26 = vpack.c.bf16 %v145_v22, %v139_v21  ;;  %v105_v28 = vld [vmem:[#allocation12 + $0xe0] sm:$0xff]  ;;  %v111_v29 = vld [vmem:[#allocation12 + $0x110] sm:$0xff] }
  0x4b   :  { %1055 = vmatpush1.bf16.msra.mxu0 %v1054_v50  ;;  %v1092_v27 = vpack.c.bf16 %v112_v24, %v106_v23  ;;  %v118_v30 = vld [vmem:[#allocation12 + $0x148] sm:$0xff]  ;;  %v124_v31 = vld [vmem:[#allocation12 + $0x178] sm:$0xff]  ;;  %v1094_v32 = vpack.c.bf16 %v111_v29, %v105_v28  ;;  %v117_v34 = vld [vmem:[#allocation12 + $0x140] sm:$0xff] }
  0x4c   :  { %1057 = vmatprep.subr.bf16.mxu0 %v1056_v55  ;;  %1075 = vmatpush1.bf16.msra.mxu1 %v1074_v5  ;;  %v1096_v33 = vpack.c.bf16 %v124_v31, %v118_v30  ;;  %v123_v35 = vld [vmem:[#allocation12 + $0x170] sm:$0xff]  ;;  %v130_v36 = vld [vmem:[#allocation12 + $0x1a8] sm:$0xff]  ;;  %v136_v37 = vld [vmem:[#allocation12 + $0x1d8] sm:$0xff] }
  0x4d   :  { %1077 = vmatprep.subr.bf16.mxu1 %v1076_v8  ;;  %v1098_v38 = vpack.c.bf16 %v123_v35, %v117_v34  ;;  %v1100_v39 = vpack.c.bf16 %v136_v37, %v130_v36  ;;  %v129_v40 = vld [vmem:[#allocation12 + $0x1a0] sm:$0xff]  ;;  %v135_v41 = vld [vmem:[#allocation12 + $0x1d0] sm:$0xff]  ;;  %v142_v42 = vld [vmem:[#allocation12 + $0x208] sm:$0xff] }
  0x4e   :  { %v148_v43 = vld [vmem:[#allocation12 + $0x238] sm:$0xff]  ;;  %v1102_v44 = vpack.c.bf16 %v135_v41, %v129_v40  ;;  %v141_v46 = vld [vmem:[#allocation12 + $0x200] sm:$0xff]  ;;  %v147_v47 = vld [vmem:[#allocation12 + $0x230] sm:$0xff] }
  0x4f   :  { %1059 = vmatpush1.bf16.msra.mxu0 %v1058_v2  ;;  %v1104_v45 = vpack.c.bf16 %v148_v43, %v142_v42  ;;  %v1106_v48 = vpack.c.bf16 %v147_v47, %v141_v46 }
  0x50   :  { %1085 = vmatprep.subr.bf16.mxu0 %v1084_v6  ;;  %1079 = vmatpush1.bf16.msra.mxu1 %v1078_v17 }
  0x51   :  { %1081 = vmatprep.subr.bf16.mxu1 %v1080_v20 }
  0x52   :  { %912 = vmatmul.mubr.msk.f32.vlgmr.msra.gmra.mrb[0].mxu0 %vm181_vm0, %v76_v14 }
  0x53   :  { %1087 = vmatpush1.bf16.msra.mxu0 %v1086_v15  ;;  %391 = vmatprep.mubr.f32.mxu0 %v1370_v0 }
  0x54   :  { %1089 = vmatprep.subr.bf16.mxu0 %v1088_v18  ;;  %1083 = vmatpush1.bf16.msra.mxu1 %v1082_v26 }
  0x57   :  { %1091 = vmatpush1.bf16.msra.mxu0 %v1090_v25  ;;  %913 = vmatmul.mubr.msk.f32.vlgmr.msra.gmra.mrb[0].mxu1 %vm181_vm0, %v76_v14 }
  0x58   :  { %1093 = vmatprep.subr.bf16.mxu0 %v1092_v27 }
  0x5b   :  { %1095 = vmatpush1.bf16.msra.mxu0 %v1094_v32 }
  0x5c   :  { %1097 = vmatprep.subr.bf16.mxu0 %v1096_v33 }
  0x5f   :  { %1099 = vmatpush1.bf16.msra.mxu0 %v1098_v38 }
  0x60   :  { %1101 = vmatprep.subr.bf16.mxu0 %v1100_v39 }
  0x63   :  { %1103 = vmatpush1.bf16.msra.mxu0 %v1102_v44 }
  0x64   :  { %1105 = vmatprep.subr.bf16.mxu0 %v1104_v45 }
  0x67   :  { %1107 = vmatpush1.bf16.msra.mxu0 %v1106_v48 }
  0x6a   :  { %914 = vmatmul.mubr.msk.f32.vlgmr.msra.gmra.mrb[2].mxu0 %vm181_vm0, %v76_v14 }
  0x6b   :  { %1250 = shalt.err (!%p1247_p12)  }
  0x6c   :  { %s1251_s20 = scalar_lea.vmem %s73_s4, 1024  ;;  %p1256_p0 = scmp.lt.s32.totalorder %s73_s4, %s73_s4 }
  0x6d   :  { %p1252_p13 = scmp.ne.s32.totalorder %s73_s4, %s1251_s20  ;;  %p1257_p1 = scmp.lt.s32.totalorder %s1251_s20, %s1251_s20 }
  0x6f   :  { %p1258_p2 = por %p1257_p1, %p1256_p0 }
  0x71   :  { %p1259_p3 = pnand %p1258_p2, %p1252_p13 }
  0x73   :  { %1262 = shalt.err (!%p1259_p3)  }
  0x74   :  { %75 = dma.hbm_to_vmem [thread:$0]  %s1621_s6, 1024, %s73_s4, [#allocation6] }
  0x75   :  { %s1263_s25 = scalar_lea.hbm %s1622_s7, 1024 }
  0x76   :  { %p1264_p4 = scmp.ne.s32.totalorder %s1622_s7, %s1263_s25  ;;  %p1267_p5 = scmp.lt.u32.totalorder %s1263_s25, %s1622_s7 }
  0x78   :  { %p1269_p6 = pnand %p1267_p5, %p1264_p4 }
  0x7a   :  { %1272 = shalt.err (!%p1269_p6)  }
  0x7b   :  { %s1273_s28 = scalar_lea.vmem %s408_s12, 1024  ;;  %p1278_p8 = scmp.lt.s32.totalorder %s408_s12, %s408_s12 }
  0x7c   :  { %p1274_p7 = scmp.ne.s32.totalorder %s408_s12, %s1273_s28  ;;  %p1279_p9 = scmp.lt.s32.totalorder %s1273_s28, %s1273_s28 }
  0x7e   :  { %p1280_p10 = por %p1279_p9, %p1278_p8 }
  0x80   :  { %p1281_p11 = pnand %p1280_p10, %p1274_p7 }
  0x82   :  { %1284 = shalt.err (!%p1281_p11)  }
  0x83   :  { %410 = dma.hbm_to_vmem [thread:$0]  %s1622_s7, 1024, %s408_s12, [#allocation6 + $0x1]  ;;  %v151_v49 = vlaneseq  ;;  %v149_v52 = vld [vmem:[%s1620_s5] sm:$0x3f] }
  0x85   :  { %v1504_v50 = vshrl.u32 %v151_v49, 7 }
  0x87   :  { %v153_v51 = vsub.s32 0, %v1504_v50  ;;  %v157_v53 = vsub.s32 1, %v1504_v50  ;;  %v161_v59 = vsub.s32 2, %v1504_v50  ;;  %v165_v61 = vsub.s32 3, %v1504_v50 }
  0x88   :  { %v169_v6 = vsub.s32 4, %v1504_v50  ;;  %v173_v7 = vsub.s32 5, %v1504_v50 }
  0x89   :  { %v154_v54 = vrot.slane %v149_v52, %v153_v51  ;;  %v158_v55 = vrot.slane %v149_v52, %v157_v53  ;;  %v162_v62 = vrot.slane %v149_v52, %v161_v59  ;;  %v166_v63 = vrot.slane %v149_v52, %v165_v61 }
  0x8a   :  { %v170_v8 = vrot.slane %v149_v52, %v169_v6  ;;  %v174_v9 = vrot.slane %v149_v52, %v173_v7 }
 0x125   :  { %v251_v56 = vpop.f32.mrb[0].mxu0 }
 0x126   :  { %v1515_v57 = vadd.f32 %v251_v56, %v154_v54  ;;  %v253_v58 = vpop.f32.mrb[1].mxu0 }
 0x127   :  { %v1518_v60 = vadd.f32 %v253_v58, %v158_v55 }
 0x12a   :  { %v322_v2 = vpop.f32.mrb[0].mxu1 }
 0x12b   :  { %v1523_v3 = vadd.f32 %v322_v2, %v162_v62  ;;  %v324_v4 = vpop.f32.mrb[1].mxu1 }
 0x12c   :  { %v1525_v5 = vadd.f32 %v324_v4, %v166_v63 }
 0x13d   :  { %v393_v10 = vpop.f32.mrb[2].mxu0 }
 0x13e   :  { %v1529_v11 = vadd.f32 %v393_v10, %v170_v8  ;;  %v395_v12 = vpop.f32.mrb[3].mxu0 }
 0x13f   :  { %v1531_v13 = vadd.f32 %v395_v12, %v174_v9 }
 0x140   :  { %1355 = dma.done.wait [#allocation6], 1024 }
 0x141   :  { %1356 = vsyncadd [#allocation6], 4294966272  ;;  %v1373_v14 = vmov 0.0|0.0   ;;  %vm1374_vm1 = vmmov 0   ;;  %v415_v15 = vld [vmem:[#allocation2] sm:$0xff]  ;;  %v416_v16 = vld [vmem:[#allocation2 + $0x8] sm:$0xff] }
 0x142   :  { %1108 = vmatprep.subr.bf16.mxu1 %v1373_v14  ;;  %976 = vmatprep.mubr.msk.f32.mxu1 %vm1374_vm1, %v1370_v0  ;;  %v417_v17 = vld [vmem:[#allocation2 + $0x10] sm:$0xff]  ;;  %v1109_v18 = vpack.c.bf16 %v416_v16, %v415_v15  ;;  %v418_v19 = vld [vmem:[#allocation2 + $0x18] sm:$0xff]  ;;  %v419_v21 = vld [vmem:[#allocation2 + $0x20] sm:$0xff]  ;;  %vm427_vm2 = vcmask 523264   ;;  %s1375_s5 = smov [#allocation4]   ;;  %s1285_s12 = scalar_lea.hbm %s1623_s8, 1024 }
 0x143   :  { %v1112_v20 = vpack.c.bf16 %v418_v19, %v417_v17  ;;  %v420_v22 = vld [vmem:[#allocation2 + $0x28] sm:$0xff]  ;;  %v421_v24 = vld [vmem:[#allocation2 + $0x30] sm:$0xff]  ;;  %v422_v25 = vld [vmem:[#allocation2 + $0x38] sm:$0xff]  ;;  %s536_s7 = sshll.u32 %s1375_s5, 4  ;;  %p1286_p12 = scmp.ne.s32.totalorder %s1623_s8, %s1285_s12  ;;  %s537_s7 = int_to_ptr.vmem [resolvable:$true] %s536_s7 }
 0x144   :  { %1110 = vmatpush3.bf16.msra.mxu1 %v1109_v18  ;;  %v1115_v23 = vpack.c.bf16 %v420_v22, %v419_v21  ;;  %v1118_v26 = vpack.c.bf16 %v422_v25, %v421_v24  ;;  %v414_v27 = vld [vmem:[#allocation7] sm:$0xff]  ;;  %p1289_p13 = scmp.lt.u32.totalorder %s1285_s12, %s1623_s8 }
 0x145   :  { %1111 = vmatprep.subr.bf16.mxu1 %v1373_v14 }
 0x146   :  { %p1291_p0 = pnand %p1289_p13, %p1286_p12 }
 0x148   :  { %1113 = vmatpush3.bf16.msra.mxu1 %v1112_v20 }
 0x149   :  { %1114 = vmatprep.subr.bf16.mxu1 %v1373_v14 }
 0x14c   :  { %1116 = vmatpush3.bf16.msra.mxu1 %v1115_v23 }
 0x14d   :  { %1117 = vmatprep.subr.bf16.mxu1 %v1373_v14 }
 0x150   :  { %1119 = vmatpush3.bf16.msra.mxu1 %v1118_v26 }
 0x153   :  { %977 = vmatmul.mubr.msk.f32.vlgmr.msra.gmra.mrb[2].mxu1 %vm427_vm2, %v414_v27 }
 0x154   :  { %1294 = shalt.err (!%p1291_p0)  }
 0x155   :  { %s1295_s17 = scalar_lea.vmem %s537_s7, 1024  ;;  %p1300_p2 = scmp.lt.s32.totalorder %s537_s7, %s537_s7 }
 0x156   :  { %p1296_p1 = scmp.ne.s32.totalorder %s537_s7, %s1295_s17  ;;  %p1301_p3 = scmp.lt.s32.totalorder %s1295_s17, %s1295_s17 }
 0x158   :  { %p1302_p4 = por %p1301_p3, %p1300_p2 }
 0x15a   :  { %p1303_p5 = pnand %p1302_p4, %p1296_p1 }
 0x15c   :  { %1306 = shalt.err (!%p1303_p5)  }
 0x15d   :  { %539 = dma.hbm_to_vmem [thread:$0]  %s1623_s8, 1024, %s537_s7, [#allocation6 + $0x2]  ;;  %v426_v28 = vrot.slane %v1474_v1, %v153_v51 }
 0x226   :  { %v497_v29 = vpop.f32.mrb[2].mxu1 }
 0x227   :  { %v498_v30 = vadd.f32 %v497_v29, %v426_v28  ;;  %v978_v31 = vpop.f32.mrb[3].mxu1 }
 0x229   :  { %v501_v32 = vrot.slane %v498_v30, 4 }
 0x22b   :  { %v502_v33 = vadd.f32 %v501_v32, %v498_v30 }
 0x22d   :  { %v503_v34 = vrot.slane %v502_v33, 2 }
 0x22f   :  { %v504_v35 = vadd.f32 %v503_v34, %v502_v33 }
 0x231   :  { %v505_v36 = vrot.slane %v504_v35, 1 }
 0x233   :  { %v506_v37 = vadd.f32 %v505_v36, %v504_v35 }
 0x235   :  { %v508_v38 = vmul.f32 0.125, %v506_v37 }
 0x237   :  { %v509_v39 = vsub.f32 %v498_v30, %v508_v38 }
 0x239   :  { %v510_v40 = vmul.f32 %v509_v39, %v509_v39 }
 0x23b   :  { %v511_v41 = vrot.slane %v510_v40, 4 }
 0x23d   :  { %v512_v42 = vadd.f32 %v511_v41, %v510_v40 }
 0x23f   :  { %v513_v43 = vrot.slane %v512_v42, 2 }
 0x241   :  { %v514_v44 = vadd.f32 %v513_v43, %v512_v42 }
 0x243   :  { %v515_v45 = vrot.slane %v514_v44, 1 }
 0x245   :  { %v516_v46 = vadd.f32 %v515_v45, %v514_v44 }
 0x247   :  { %v517_v47 = vmul.f32 0.125, %v516_v46 }
 0x249   :  { %v518_v48 = vadd.f32 1e-05, %v517_v47 }
 0x24b   :  { %1169 = vrsqrt.f32 %v518_v48 }
 0x255   :  { %v1170_v49 = vpop.eup %1169 }
 0x256   :  { %v520_v51 = vmul.f32 %v1170_v49, %v1515_v57 }
 0x258   :  { %v521_v52 = vmul.f32 %v520_v51, %v508_v38  ;;  %v523_v55 = vmul.f32 %v520_v51, %v498_v30 }
 0x25a   :  { %v522_v54 = vsub.f32 %v1518_v60, %v521_v52 }
 0x25c   :  { %v524_v56 = vadd.f32 %v523_v55, %v522_v54 }
 0x25e   :  { %vm525_vm3 = vcmp.ge.f32.partialorder %v524_v56, 0.0  ;;  %v526_v58 = vmul.f32 0.01, %v524_v56 }
 0x260   :  { %v527_v61 = vsel %vm525_vm3, %v524_v56, %v526_v58 }
 0x261   :  { %1357 = dma.done.wait [#allocation6 + $0x1], 1024 }
 0x262   :  { %1358 = vsyncadd [#allocation6 + $0x1], 4294966272  ;;  %1120 = vmatprep.subr.bf16.mxu1 %v1373_v14  ;;  %995 = vmatprep.mubr.msk.f32.mxu1 %vm1374_vm1, %v1370_v0  ;;  %v542_v62 = vld [vmem:[#allocation3] sm:$0xff]  ;;  %v543_v63 = vld [vmem:[#allocation3 + $0x8] sm:$0xff]  ;;  %s1376_s8 = smov [#allocation5]   ;;  %s1307_s23 = scalar_lea.hbm %s1624_s9, 1024 }
 0x263   :  { %v544_v2 = vld [vmem:[#allocation3 + $0x10] sm:$0xff]  ;;  %v1121_v4 = vpack.c.bf16 %v543_v63, %v542_v62  ;;  %v545_v57 = vld [vmem:[#allocation3 + $0x18] sm:$0xff]  ;;  %v546_v60 = vld [vmem:[#allocation3 + $0x20] sm:$0xff]  ;;  %s661_s20 = sshll.u32 %s1376_s8, 4  ;;  %p1308_p6 = scmp.ne.s32.totalorder %s1624_s9, %s1307_s23  ;;  %s662_s20 = int_to_ptr.vmem [resolvable:$true] %s661_s20 }
 0x264   :  { %v1124_v6 = vpack.c.bf16 %v545_v57, %v544_v2  ;;  %v547_v7 = vld [vmem:[#allocation3 + $0x28] sm:$0xff]  ;;  %v548_v9 = vld [vmem:[#allocation3 + $0x30] sm:$0xff]  ;;  %v549_v10 = vld [vmem:[#allocation3 + $0x38] sm:$0xff]  ;;  %p1311_p7 = scmp.lt.u32.totalorder %s1307_s23, %s1624_s9 }
 0x265   :  { %1122 = vmatpush3.bf16.msra.mxu1 %v1121_v4  ;;  %v1127_v8 = vpack.c.bf16 %v547_v7, %v546_v60  ;;  %v1130_v12 = vpack.c.bf16 %v549_v10, %v548_v9 }
 0x266   :  { %1123 = vmatprep.subr.bf16.mxu1 %v1373_v14  ;;  %p1313_p8 = pnand %p1311_p7, %p1308_p6 }
 0x269   :  { %1125 = vmatpush3.bf16.msra.mxu1 %v1124_v6 }
 0x26a   :  { %1126 = vmatprep.subr.bf16.mxu1 %v1373_v14 }
 0x26d   :  { %1128 = vmatpush3.bf16.msra.mxu1 %v1127_v8 }
 0x26e   :  { %1129 = vmatprep.subr.bf16.mxu1 %v1373_v14 }
 0x271   :  { %1131 = vmatpush3.bf16.msra.mxu1 %v1130_v12 }
 0x274   :  { %996 = vmatmul.mubr.msk.f32.vlgmr.msra.gmra.mrb[4].mxu1 %vm427_vm2, %v527_v61 }
 0x275   :  { %1316 = shalt.err (!%p1313_p8)  }
 0x276   :  { %s1317_s16 = scalar_lea.vmem %s662_s20, 1024  ;;  %p1322_p10 = scmp.lt.s32.totalorder %s662_s20, %s662_s20 }
 0x277   :  { %p1318_p9 = scmp.ne.s32.totalorder %s662_s20, %s1317_s16  ;;  %p1323_p11 = scmp.lt.s32.totalorder %s1317_s16, %s1317_s16 }
 0x279   :  { %p1324_p12 = por %p1323_p11, %p1322_p10 }
 0x27b   :  { %p1325_p13 = pnand %p1324_p12, %p1318_p9 }
 0x27d   :  { %1328 = shalt.err (!%p1325_p13)  }
 0x27e   :  { %664 = dma.hbm_to_vmem [thread:$0]  %s1624_s9, 1024, %s662_s20, [#allocation6 + $0x3]  ;;  %v553_v15 = vrot.slane %v1474_v1, %v157_v53 }
 0x347   :  { %v623_v16 = vpop.f32.mrb[4].mxu1 }
 0x348   :  { %v624_v17 = vadd.f32 %v623_v16, %v553_v15  ;;  %v997_v18 = vpop.f32.mrb[5].mxu1 }
 0x34a   :  { %v627_v19 = vrot.slane %v624_v17, 4 }
 0x34c   :  { %v628_v20 = vadd.f32 %v627_v19, %v624_v17 }
 0x34e   :  { %v629_v21 = vrot.slane %v628_v20, 2 }
 0x350   :  { %v630_v22 = vadd.f32 %v629_v21, %v628_v20 }
 0x352   :  { %v631_v23 = vrot.slane %v630_v22, 1 }
 0x354   :  { %v632_v24 = vadd.f32 %v631_v23, %v630_v22 }
 0x356   :  { %v633_v25 = vmul.f32 0.125, %v632_v24 }
 0x358   :  { %v634_v26 = vsub.f32 %v624_v17, %v633_v25 }
 0x35a   :  { %v635_v27 = vmul.f32 %v634_v26, %v634_v26 }
 0x35c   :  { %v636_v28 = vrot.slane %v635_v27, 4 }
 0x35e   :  { %v637_v29 = vadd.f32 %v636_v28, %v635_v27 }
 0x360   :  { %v638_v30 = vrot.slane %v637_v29, 2 }
 0x362   :  { %v639_v31 = vadd.f32 %v638_v30, %v637_v29 }
 0x364   :  { %v640_v32 = vrot.slane %v639_v31, 1 }
 0x366   :  { %v641_v33 = vadd.f32 %v640_v32, %v639_v31 }
 0x368   :  { %v642_v34 = vmul.f32 0.125, %v641_v33 }
 0x36a   :  { %v643_v53 = vadd.f32 1e-05, %v642_v34 }
 0x36c   :  { %1171 = vrsqrt.f32 %v643_v53 }
 0x376   :  { %v1172_v35 = vpop.eup %1171 }
 0x377   :  { %v645_v36 = vmul.f32 %v1172_v35, %v1523_v3 }
 0x379   :  { %v646_v37 = vmul.f32 %v645_v36, %v633_v25  ;;  %v648_v39 = vmul.f32 %v645_v36, %v624_v17 }
 0x37b   :  { %v647_v38 = vsub.f32 %v1525_v5, %v646_v37 }
 0x37d   :  { %v649_v40 = vadd.f32 %v648_v39, %v647_v38 }
 0x37f   :  { %vm650_vm4 = vcmp.ge.f32.partialorder %v649_v40, 0.0  ;;  %v651_v41 = vmul.f32 0.01, %v649_v40 }
 0x381   :  { %v652_v42 = vsel %vm650_vm4, %v649_v40, %v651_v41 }
 0x382   :  { %1359 = dma.done.wait [#allocation6 + $0x2], 1024 }
 0x383   :  { %1360 = vsyncadd [#allocation6 + $0x2], 4294966272  ;;  %1132 = vmatprep.subr.bf16.mxu0 %v1373_v14  ;;  %1014 = vmatprep.mubr.msk.f32.mxu0 %vm1374_vm1, %v1370_v0  ;;  %v667_v43 = vld [vmem:[#allocation4] sm:$0xff]  ;;  %v668_v44 = vld [vmem:[#allocation4 + $0x8] sm:$0xff]  ;;  %v678_v55 = vrot.slane %v1474_v1, %v161_v59 }
 0x384   :  { %v669_v45 = vld [vmem:[#allocation4 + $0x10] sm:$0xff]  ;;  %v1133_v46 = vpack.c.bf16 %v668_v44, %v667_v43  ;;  %v670_v3 = vld [vmem:[#allocation4 + $0x18] sm:$0xff]  ;;  %v671_v5 = vld [vmem:[#allocation4 + $0x20] sm:$0xff] }
 0x385   :  { %v1136_v47 = vpack.c.bf16 %v670_v3, %v669_v45  ;;  %v672_v48 = vld [vmem:[#allocation4 + $0x28] sm:$0xff]  ;;  %v673_v51 = vld [vmem:[#allocation4 + $0x30] sm:$0xff]  ;;  %v674_v52 = vld [vmem:[#allocation4 + $0x38] sm:$0xff] }
 0x386   :  { %1134 = vmatpush3.bf16.msra.mxu0 %v1133_v46  ;;  %v1139_v49 = vpack.c.bf16 %v672_v48, %v671_v5  ;;  %v1142_v54 = vpack.c.bf16 %v674_v52, %v673_v51 }
 0x387   :  { %1135 = vmatprep.subr.bf16.mxu0 %v1373_v14 }
 0x38a   :  { %1137 = vmatpush3.bf16.msra.mxu0 %v1136_v47 }
 0x38b   :  { %1138 = vmatprep.subr.bf16.mxu0 %v1373_v14 }
 0x38e   :  { %1140 = vmatpush3.bf16.msra.mxu0 %v1139_v49 }
 0x38f   :  { %1141 = vmatprep.subr.bf16.mxu0 %v1373_v14 }
 0x392   :  { %1143 = vmatpush3.bf16.msra.mxu0 %v1142_v54 }
 0x395   :  { %1015 = vmatmul.mubr.msk.f32.vlgmr.msra.gmra.mrb[4].mxu0 %vm427_vm2, %v652_v42 }
 0x468   :  { %v748_v56 = vpop.f32.mrb[4].mxu0 }
 0x469   :  { %v749_v58 = vadd.f32 %v748_v56, %v678_v55  ;;  %v1016_v61 = vpop.f32.mrb[5].mxu0 }
 0x46b   :  { %v752_v62 = vrot.slane %v749_v58, 4 }
 0x46d   :  { %v753_v63 = vadd.f32 %v752_v62, %v749_v58 }
 0x46f   :  { %v754_v2 = vrot.slane %v753_v63, 2 }
 0x471   :  { %v755_v4 = vadd.f32 %v754_v2, %v753_v63 }
 0x473   :  { %v756_v57 = vrot.slane %v755_v4, 1 }
 0x475   :  { %v757_v6 = vadd.f32 %v756_v57, %v755_v4 }
 0x477   :  { %v758_v60 = vmul.f32 0.125, %v757_v6 }
 0x479   :  { %v759_v7 = vsub.f32 %v749_v58, %v758_v60 }
 0x47b   :  { %v760_v8 = vmul.f32 %v759_v7, %v759_v7 }
 0x47d   :  { %v761_v9 = vrot.slane %v760_v8, 4 }
 0x47f   :  { %v762_v10 = vadd.f32 %v761_v9, %v760_v8 }
 0x481   :  { %v763_v12 = vrot.slane %v762_v10, 2 }
 0x483   :  { %v764_v15 = vadd.f32 %v763_v12, %v762_v10 }
 0x485   :  { %v765_v16 = vrot.slane %v764_v15, 1 }
 0x487   :  { %v766_v50 = vadd.f32 %v765_v16, %v764_v15 }
 0x489   :  { %v767_v17 = vmul.f32 0.125, %v766_v50 }
 0x48b   :  { %v768_v1 = vadd.f32 1e-05, %v767_v17 }
 0x48d   :  { %1173 = vrsqrt.f32 %v768_v1 }
 0x497   :  { %v1174_v59 = vpop.eup %1173 }
 0x498   :  { %v770_v18 = vmul.f32 %v1174_v59, %v1529_v11 }
 0x49a   :  { %v771_v19 = vmul.f32 %v770_v18, %v758_v60  ;;  %v773_v21 = vmul.f32 %v770_v18, %v749_v58 }
 0x49c   :  { %v772_v20 = vsub.f32 %v1531_v13, %v771_v19 }
 0x49e   :  { %v774_v22 = vadd.f32 %v773_v21, %v772_v20 }
 0x4a0   :  { %vm775_vm5 = vcmp.ge.f32.partialorder %v774_v22, 0.0  ;;  %v776_v23 = vmul.f32 0.01, %v774_v22 }
 0x4a2   :  { %v777_v24 = vsel %vm775_vm5, %v774_v22, %v776_v23 }
 0x4a3   :  { %1361 = dma.done.wait [#allocation6 + $0x3], 1024 }
 0x4a4   :  { %1362 = vsyncadd [#allocation6 + $0x3], 4294966272  ;;  %1144 = vmatprep.subr.bf16.mxu1 %v1373_v14  ;;  %1033 = vmatprep.mubr.msk.f32.mxu1 %vm1374_vm1, %v1370_v0  ;;  %v780_v25 = vld [vmem:[#allocation5] sm:$0xff]  ;;  %v781_v26 = vld [vmem:[#allocation5 + $0x8] sm:$0xff]  ;;  %s1377_s29 = smov [#allocation13]  }
 0x4a5   :  { %v782_v27 = vld [vmem:[#allocation5 + $0x10] sm:$0xff]  ;;  %v1145_v28 = vpack.c.bf16 %v781_v26, %v780_v25  ;;  %v783_v11 = vld [vmem:[#allocation5 + $0x18] sm:$0xff]  ;;  %v784_v13 = vld [vmem:[#allocation5 + $0x20] sm:$0xff]  ;;  %s875_s30 = sshll.u32 %s1377_s29, 4  ;;  %s876_s30 = int_to_ptr.vmem [resolvable:$true] %s875_s30 }
 0x4a6   :  { %v1148_v29 = vpack.c.bf16 %v783_v11, %v782_v27  ;;  %v785_v30 = vld [vmem:[#allocation5 + $0x28] sm:$0xff]  ;;  %v786_v32 = vld [vmem:[#allocation5 + $0x30] sm:$0xff]  ;;  %v787_v33 = vld [vmem:[#allocation5 + $0x38] sm:$0xff]  ;;  %s1329_s2 = scalar_lea.vmem %s876_s30, 128  ;;  %p1334_p1 = scmp.lt.s32.totalorder %s876_s30, %s876_s30 }
 0x4a7   :  { %1146 = vmatpush3.bf16.msra.mxu1 %v1145_v28  ;;  %v1151_v31 = vpack.c.bf16 %v785_v30, %v784_v13  ;;  %v1154_v34 = vpack.c.bf16 %v787_v33, %v786_v32  ;;  %v918_v0 = vld [vmem:[%s1618_s3] ss:$0 sm:$0xff]  ;;  %p1330_p0 = scmp.ne.s32.totalorder %s876_s30, %s1329_s2  ;;  %p1335_p2 = scmp.lt.s32.totalorder %s1329_s2, %s1329_s2 }
 0x4a8   :  { %1147 = vmatprep.subr.bf16.mxu1 %v1373_v14 }
 0x4a9   :  { %p1336_p3 = por %p1335_p2, %p1334_p1 }
 0x4ab   :  { %1149 = vmatpush3.bf16.msra.mxu1 %v1148_v29  ;;  %p1337_p4 = pnand %p1336_p3, %p1330_p0 }
 0x4ac   :  { %1150 = vmatprep.subr.bf16.mxu1 %v1373_v14 }
 0x4af   :  { %1152 = vmatpush3.bf16.msra.mxu1 %v1151_v31 }
 0x4b0   :  { %1153 = vmatprep.subr.bf16.mxu1 %v1373_v14 }
 0x4b3   :  { %1155 = vmatpush3.bf16.msra.mxu1 %v1154_v34 }
 0x4b6   :  { %1034 = vmatmul.mubr.msk.f32.vlgmr.msra.gmra.mrb[6].mxu1 %vm427_vm2, %v777_v24 }
 0x589   :  { %v864_v53 = vpop.f32.mrb[6].mxu1 }
 0x58a   :  { %v865_v35 = vadd.f32 %v918_v0, %v864_v53  ;;  %v1035_v36 = vpop.f32.mrb[7].mxu1 }
 0x58c   :  { %868 = vst [vmem:[#allocation13] sm:$0xff] %v865_v35 }
 0x58d   :  { %1340 = shalt.err (!%p1337_p4)
}
 0x58e   :  { %s1341_s4 = scalar_lea.hbm %s1625_s10, 128 }
 0x58f   :  { %p1342_p5 = scmp.ne.s32.totalorder %s1625_s10, %s1341_s4  ;;  %p1345_p6 = scmp.lt.u32.totalorder %s1341_s4, %s1625_s10 }
 0x591   :  { %p1347_p7 = pnand %p1345_p6, %p1342_p5 }
 0x593   :  { %1350 = shalt.err (!%p1347_p7)
}
 0x594   :  { %878 = dma.vmem_to_hbm [thread:$0]  %s876_s30, 128, %s1625_s10, [#allocation9]  }
 0x595   :  { %1363 = dma.done.wait [#allocation9], 128  }
 0x596   :  { %1364 = vsyncadd [#allocation9], 4294967168 }
 0x597   :  { %882 = vsyncpa [#allocation8], 1 }
 0x598   :  { %883 = vsyncpa [#allocation11], 1 }
 0x599   :  { %884 = vsyncpa [#allocation9], 1 }
 0x59a   :  { %885 = vsyncmov [#allocation6] }
 0x59d   :  { %s886_s14 = vpop.sfrf %885 }
 0x59e   :  { %p920_p8 = scmp.ne.s32.totalorder %s886_s14, 0 }
 0x5a0   :  { %890 = shalt.err (%p920_p8)  }
 0x5a1   :  { %892 = vsyncmov [#allocation6 + $0x1] }
 0x5a4   :  { %s893_s17 = vpop.sfrf %892 }
 0x5a5   :  { %p921_p9 = scmp.ne.s32.totalorder %s893_s17, 0 }
 0x5a7   :  { %897 = shalt.err (%p921_p9)  }
 0x5a8   :  { %899 = vsyncmov [#allocation6 + $0x2] }
 0x5ab   :  { %s900_s18 = vpop.sfrf %899 }
 0x5ac   :  { %p922_p10 = scmp.ne.s32.totalorder %s900_s18, 0 }
 0x5ae   :  { %904 = shalt.err (%p922_p10)  }
 0x5af   :  { %906 = vsyncmov [#allocation6 + $0x3] }
 0x5b2   :  { %s907_s19 = vpop.sfrf %906 }
 0x5b3   :  { %p923_p11 = scmp.ne.s32.totalorder %s907_s19, 0 }
 0x5b5   :  { %911 = shalt.err (%p923_p11)  }

</bundles_post_ra>
